<compile_context>
chip_gen: v6e
topology: v6e:2x2x1
jax: 0.10.0
libtpu: 0.0.40
codegen_flags: <defaults>
</compile_context>

<pallas_src>
import jax
import jax.numpy as jnp
from jax import lax
from jax.experimental import pallas as pl
from jax.experimental.pallas import tpu as pltpu

N = 5          # number of nodes
F_IN = 2       # input feature dim  (F)
F_PRIME = 3    # output feature dim (F')
LRELU_SLOPE = 0.01  # torch nn.LeakyReLU default negative_slope

A_LIST = [[0, 1, 0, 0, 0],
          [1, 0, 1, 0, 0],
          [0, 1, 0, 1, 1],
          [0, 0, 1, 0, 0],
          [0, 0, 1, 0, 0]]

# Row layout of the packed (8, 128) parameter slab:
#   rows [0 : F_IN)                 , cols [0 : F')  -> W        (F, F')
#   row  [F_IN]                     , cols [0 : F')  -> b_W      (1, F')
#   rows [F_IN+1 : F_IN+1+F')       , cols [0 : 2)   -> [a_src | a_tar]  (F', 2)
#   row  [F_IN+1+F']                , col  0         -> a_b      (scalar)
_ROW_W = 0
_ROW_WB = F_IN
_ROW_A = F_IN + 1
_ROW_AB = F_IN + 1 + F_PRIME


def gan_kernel(p_ref, h_ref, adj_ref, out_ref):
    params = p_ref[...]                                         # (8, 128) packed slab
    w = params[_ROW_W:_ROW_W + F_IN, 0:F_PRIME]                 # (F, F')
    wb = params[_ROW_WB:_ROW_WB + 1, 0:F_PRIME]                 # (1, F')
    a_cat = params[_ROW_A:_ROW_A + F_PRIME, 0:2]                # (F', 2) = [a_src | a_tar]
    ab = params[_ROW_AB:_ROW_AB + 1, 0:1]                       # (1, 1)

    H = h_ref[...]                                              # (N, F)
    WH = jnp.dot(H, w, preferred_element_type=jnp.float32) + wb  # (N, F')

    # One fused matmul for both attention projections.
    S = jnp.dot(WH, a_cat, preferred_element_type=jnp.float32)  # (N, 2)
    s_src = S[:, 0:1]                                           # (N, 1)
    s_tar = S[:, 1:2]                                           # (N, 1)

    # logits[i, j] = s_src[i] + a_b + s_tar[j], expressed as a rank-2 MXU
    # contraction so no XLU transpose / broadcast materialization is needed:
    #   P = [s_src + a_b, 1],  Q = [1, s_tar],  logits = P @ Q^T
    col = lax.broadcasted_iota(jnp.int32, (N, 2), 1)
    P = jnp.where(col == 0, s_src + ab, 1.0)                    # (N, 2)
    Q = jnp.where(col == 0, 1.0, s_tar)                         # (N, 2)
    logits = lax.dot_general(P, Q, (((1,), (1,)), ((), ())),
                             preferred_element_type=jnp.float32)  # (N, N)

    # LeakyReLU then exp -> unnormalized attention for ALL pairs
    act = jnp.where(logits >= 0, logits, LRELU_SLOPE * logits)
    e = jnp.exp(act)                                            # (N, N)
    # normalizer only sums neighbor terms (e_ij * A[i][j]), as in forward()
    denom = jnp.sum(e * adj_ref[...], axis=1, keepdims=True)    # (N, 1)
    alpha = e * pl.reciprocal(denom, approx=True)               # divide -> EUP
    h_prime = jnp.dot(alpha, WH, preferred_element_type=jnp.float32)  # (N, F')
    sig = pl.reciprocal(1.0 + jnp.exp(-h_prime), approx=True)   # sigmoid, divide -> EUP
    out_ref[...] = sig.astype(out_ref.dtype)


def pack_params(w, wb, a_src, a_tar, ab):
    """Pack all tiny parameters into a single (8, 128) f32 VMEM slab."""
    slab = jnp.zeros((8, 128), jnp.float32)
    slab = slab.at[_ROW_W:_ROW_W + F_IN, 0:F_PRIME].set(w)
    slab = slab.at[_ROW_WB:_ROW_WB + 1, 0:F_PRIME].set(wb)
    slab = slab.at[_ROW_A:_ROW_A + F_PRIME, 0:2].set(
        jnp.concatenate([a_src, a_tar], axis=1))
    slab = slab.at[_ROW_AB, 0].set(ab[0, 0])
    return slab


def gan_forward(H_batched, A, params_slab):
    """Apply the GAN layer independently to each of B graphs (grid over batch)."""
    B = H_batched.shape[0]
    return pl.pallas_call(
        gan_kernel,
        out_shape=jax.ShapeDtypeStruct((B, N, F_PRIME), jnp.float32),
        grid=(B,),
        in_specs=[
            pl.BlockSpec((8, 128), lambda b: (0, 0)),            # packed params (shared)
            pl.BlockSpec((None, N, F_IN), lambda b: (b, 0, 0)),  # per-graph H
            pl.BlockSpec((N, N), lambda b: (0, 0)),              # adjacency (shared)
        ],
        out_specs=pl.BlockSpec((None, N, F_PRIME), lambda b: (b, 0, 0)),
        compiler_params=pltpu.CompilerParams(
            dimension_semantics=("parallel",)),                  # shards batch on v7x's 2 TCs
    )(params_slab, H_batched, A)


def gan_reference(H, A, w, wb, a_src, a_tar, ab):
    """Pure-JAX reference mirroring the (de-bugged) PyTorch forward, exact math."""
    WH = H @ w + wb                                   # (N, F')
    s_src = WH @ a_src                                # (N, 1)
    s_tar = WH @ a_tar                                # (N, 1)
    logits = s_src + s_tar.T + ab[0, 0]               # (N, N)
    act = jnp.where(logits >= 0, logits, LRELU_SLOPE * logits)
    e = jnp.exp(act)
    denom = jnp.sum(e * A, axis=1, keepdims=True)
    alpha = e / denom
    return jax.nn.sigmoid(alpha @ WH)


if __name__ == "__main__":
    key = jax.random.PRNGKey(0)
    k_h, k_w, k_wb, k_a, k_ab = jax.random.split(key, 5)

    B = 4  # batch of graphs processed in one pallas_call (amortizes launch overhead)

    # Input node features (torch.rand(N, F) analogue), one set per graph.
    Hb = jax.random.uniform(k_h, (B, N, F_IN), dtype=jnp.float32)
    A = jnp.array(A_LIST, dtype=jnp.float32)

    # Deterministic parameter init (synthetic; shapes follow the module).
    # self.W : Linear(F, F')   -> weight stored transposed (F, F'), bias (1, F')
    w = 0.3 * jax.random.normal(k_w, (F_IN, F_PRIME), dtype=jnp.float32)
    wb = 0.1 * jax.random.normal(k_wb, (1, F_PRIME), dtype=jnp.float32)
    # self.a : Linear(2*F', 1) -> split into source/target halves + scalar bias
    a_full = 0.3 * jax.random.normal(k_a, (2 * F_PRIME, 1), dtype=jnp.float32)
    a_src = a_full[:F_PRIME, :]      # (F', 1)
    a_tar = a_full[F_PRIME:, :]      # (F', 1)
    ab = 0.1 * jax.random.normal(k_ab, (1, 1), dtype=jnp.float32)

    params_slab = pack_params(w, wb, a_src, a_tar, ab)

    out = gan_forward(Hb, A, params_slab)
    out = jax.block_until_ready(out)

    ref = jax.vmap(lambda h: gan_reference(h, A, w, wb, a_src, a_tar, ab))(Hb)
    assert out.shape == (B, N, F_PRIME)
    # Tolerance relaxed slightly because pl.reciprocal(approx=True) uses the
    # EUP's approximate reciprocal (vs. the exact divide in the reference).
    assert jnp.allclose(out, ref, atol=5e-3, rtol=5e-3), (out, ref)

    print("KERNEL_OK")
</pallas_src>

<mosaic_0001>
module attributes {stable_mosaic.version = 11 : i64} {
  func.func @gan_kernel(%arg0: i32, %arg1: memref<8x128xf32, #tpu.memory_space<vmem>>, %arg2: memref<1x5x2xf32, #tpu.memory_space<vmem>>, %arg3: memref<5x5xf32, #tpu.memory_space<vmem>>, %arg4: memref<1x5x3xf32, #tpu.memory_space<vmem>>) attributes {dimension_semantics = [#tpu.dimension_semantics<parallel>], iteration_bounds = array<i64: 4>, scalar_prefetch = 0 : i64, scratch_operands = 0 : i64, tpu.core_type = #tpu.core_type<tc>, window_params = [{pipeline_mode = #tpu.pipeline_mode<synchronous>, transform_indices = @transform_0, window_bounds = array<i64: 8, 128>}, {transform_indices = @transform_1, window_bounds = array<i64: 1, 5, 2>}, {pipeline_mode = #tpu.pipeline_mode<synchronous>, transform_indices = @transform_2, window_bounds = array<i64: 5, 5>}, {transform_indices = @transform_3, window_bounds = array<i64: 1, 5, 3>}]} {
    %c0 = arith.constant 0 : index
    %c0_0 = arith.constant 0 : index
    %0 = vector.load %arg1[%c0, %c0_0] : memref<8x128xf32, #tpu.memory_space<vmem>>, vector<8x128xf32>
    %1 = vector.extract_strided_slice %0 {offsets = [0, 0], sizes = [2, 3], strides = [1, 1]} : vector<8x128xf32> to vector<2x3xf32>
    %2 = vector.extract_strided_slice %0 {offsets = [2, 0], sizes = [1, 3], strides = [1, 1]} : vector<8x128xf32> to vector<1x3xf32>
    %3 = vector.extract_strided_slice %0 {offsets = [3, 0], sizes = [3, 2], strides = [1, 1]} : vector<8x128xf32> to vector<3x2xf32>
    %4 = vector.extract_strided_slice %0 {offsets = [6, 0], sizes = [1, 1], strides = [1, 1]} : vector<8x128xf32> to vector<1x1xf32>
    %c0_1 = arith.constant 0 : index
    %c0_2 = arith.constant 0 : index
    %c0_3 = arith.constant 0 : index
    %5 = vector.load %arg2[%c0_1, %c0_2, %c0_3] : memref<1x5x2xf32, #tpu.memory_space<vmem>>, vector<1x5x2xf32>
    %6 = vector.shape_cast %5 : vector<1x5x2xf32> to vector<5x2xf32>
    %cst = arith.constant dense<0.000000e+00> : vector<5x3xf32>
    %7 = tpu.matmul %6, %1, %cst {dimension_numbers = #tpu.dot_dimension_numbers<[1], [0], [0], [1], [0, 0, 1, 1], [], []>} : vector<5x2xf32>, vector<2x3xf32>, vector<5x3xf32> -> vector<5x3xf32>
    %8 = vector.broadcast %2 : vector<1x3xf32> to vector<5x3xf32>
    %9 = arith.addf %7, %8 : vector<5x3xf32>
    %cst_4 = arith.constant dense<0.000000e+00> : vector<5x2xf32>
    %10 = tpu.matmul %9, %3, %cst_4 {dimension_numbers = #tpu.dot_dimension_numbers<[1], [0], [0], [1], [0, 0, 1, 1], [], []>} : vector<5x3xf32>, vector<3x2xf32>, vector<5x2xf32> -> vector<5x2xf32>
    %11 = vector.extract_strided_slice %10 {offsets = [0, 0], sizes = [5, 1], strides = [1, 1]} : vector<5x2xf32> to vector<5x1xf32>
    %12 = vector.extract_strided_slice %10 {offsets = [0, 1], sizes = [5, 1], strides = [1, 1]} : vector<5x2xf32> to vector<5x1xf32>
    %13 = tpu.iota {dimensions = array<i32: 1>} : vector<5x2xi32>
    %c0_i32 = arith.constant 0 : i32
    %14 = vector.broadcast %c0_i32 : i32 to vector<5x2xi32>
    %15 = arith.cmpi eq, %13, %14 : vector<5x2xi32>
    %16 = vector.broadcast %4 : vector<1x1xf32> to vector<5x1xf32>
    %17 = arith.addf %11, %16 : vector<5x1xf32>
    %cst_5 = arith.constant 1.000000e+00 : f32
    %18 = vector.shape_cast %17 : vector<5x1xf32> to vector<5x1xf32>
    %19 = vector.broadcast %18 : vector<5x1xf32> to vector<5x2xf32>
    %20 = vector.broadcast %cst_5 : f32 to vector<5x2xf32>
    %21 = arith.select %15, %19, %20 : vector<5x2xi1>, vector<5x2xf32>
    %c0_i32_6 = arith.constant 0 : i32
    %22 = vector.broadcast %c0_i32_6 : i32 to vector<5x2xi32>
    %23 = arith.cmpi eq, %13, %22 : vector<5x2xi32>
    %cst_7 = arith.constant 1.000000e+00 : f32
    %24 = vector.broadcast %cst_7 : f32 to vector<5x2xf32>
    %25 = vector.shape_cast %12 : vector<5x1xf32> to vector<5x1xf32>
    %26 = vector.broadcast %25 : vector<5x1xf32> to vector<5x2xf32>
    %27 = arith.select %23, %24, %26 : vector<5x2xi1>, vector<5x2xf32>
    %cst_8 = arith.constant dense<0.000000e+00> : vector<5x5xf32>
    %28 = tpu.matmul %21, %27, %cst_8 {dimension_numbers = #tpu.dot_dimension_numbers<[1], [1], [0], [0], [0, 0, 1, 0], [], []>} : vector<5x2xf32>, vector<5x2xf32>, vector<5x5xf32> -> vector<5x5xf32>
    %cst_9 = arith.constant 0.000000e+00 : f32
    %29 = vector.broadcast %cst_9 : f32 to vector<5x5xf32>
    %30 = arith.cmpf oge, %28, %29 : vector<5x5xf32>
    %cst_10 = arith.constant 0.00999999977 : f32
    %31 = vector.broadcast %cst_10 : f32 to vector<5x5xf32>
    %32 = arith.mulf %31, %28 : vector<5x5xf32>
    %33 = arith.select %30, %28, %32 : vector<5x5xi1>, vector<5x5xf32>
    %34 = math.exp %33 : vector<5x5xf32>
    %c0_11 = arith.constant 0 : index
    %c0_12 = arith.constant 0 : index
    %35 = vector.load %arg3[%c0_11, %c0_12] : memref<5x5xf32, #tpu.memory_space<vmem>>, vector<5x5xf32>
    %36 = arith.mulf %34, %35 : vector<5x5xf32>
    %cst_13 = arith.constant dense<0.000000e+00> : vector<5xf32>
    %37 = vector.multi_reduction <add>, %36, %cst_13 [1] : vector<5x5xf32> to vector<5xf32>
    %38 = vector.shape_cast %37 : vector<5xf32> to vector<5x1xf32>
    %39 = tpu.reciprocal %38 {approx = true} : vector<5x1xf32> -> vector<5x1xf32>
    %40 = vector.broadcast %39 : vector<5x1xf32> to vector<5x5xf32>
    %41 = arith.mulf %34, %40 : vector<5x5xf32>
    %cst_14 = arith.constant dense<0.000000e+00> : vector<5x3xf32>
    %42 = tpu.matmul %41, %9, %cst_14 {dimension_numbers = #tpu.dot_dimension_numbers<[1], [0], [0], [1], [0, 0, 1, 1], [], []>} : vector<5x5xf32>, vector<5x3xf32>, vector<5x3xf32> -> vector<5x3xf32>
    %cst_15 = arith.constant 0.000000e+00 : f32
    %43 = vector.broadcast %cst_15 : f32 to vector<5x3xf32>
    %44 = arith.subf %43, %42 : vector<5x3xf32>
    %45 = math.exp %44 : vector<5x3xf32>
    %cst_16 = arith.constant 1.000000e+00 : f32
    %46 = vector.broadcast %cst_16 : f32 to vector<5x3xf32>
    %47 = arith.addf %46, %45 : vector<5x3xf32>
    %48 = tpu.reciprocal %47 {approx = true} : vector<5x3xf32> -> vector<5x3xf32>
    %c0_17 = arith.constant 0 : index
    %c0_18 = arith.constant 0 : index
    %c0_19 = arith.constant 0 : index
    %49 = vector.load %arg4[%c0_17, %c0_18, %c0_19] : memref<1x5x3xf32, #tpu.memory_space<vmem>>, vector<1x5x3xf32>
    %50 = vector.shape_cast %49 : vector<1x5x3xf32> to vector<5x3xf32>
    %51 = vector.shape_cast %48 : vector<5x3xf32> to vector<1x5x3xf32>
    tpu.vector_store %arg4[%c0_17, %c0_18, %c0_19], %51 {strides = array<i32>} : memref<1x5x3xf32, #tpu.memory_space<vmem>>, vector<1x5x3xf32>,
    return
  }
  func.func @transform_0(%arg0: i32) -> (i32, i32) {
    %c0_i32 = arith.constant 0 : i32
    %c0_i32_0 = arith.constant 0 : i32
    %c0_i32_1 = arith.constant 0 : i32
    return %c0_i32, %c0_i32_0 : i32, i32
  }
  func.func @transform_1(%arg0: i32) -> (i32, i32, i32) {
    %c0_i32 = arith.constant 0 : i32
    %c0_i32_0 = arith.constant 0 : i32
    %c0_i32_1 = arith.constant 0 : i32
    return %arg0, %c0_i32, %c0_i32_0 : i32, i32, i32
  }
  func.func @transform_2(%arg0: i32) -> (i32, i32) {
    %c0_i32 = arith.constant 0 : i32
    %c0_i32_0 = arith.constant 0 : i32
    %c0_i32_1 = arith.constant 0 : i32
    return %c0_i32, %c0_i32_0 : i32, i32
  }
  func.func @transform_3(%arg0: i32) -> (i32, i32, i32) {
    %c0_i32 = arith.constant 0 : i32
    %c0_i32_0 = arith.constant 0 : i32
    %c0_i32_1 = arith.constant 0 : i32
    return %arg0, %c0_i32, %c0_i32_0 : i32, i32, i32
  }
}

</mosaic_0001>

<bundles_post_ra>
// kernel: tpu_custom_call.1
= control target key start
LH: loop header
LB: loop body
LE: loop exit
PB: predicated region body
PF: predicated region fallthrough
CT: control target
= control target key end

     0   :  { %s674_s12 = smov 0   ;;  %s711_s0 = inlined_call_operand.vmem [shape: f32[8,128], index: 0, kind: input, shape index: {}]   ;;  %s712_s1 = inlined_call_operand.vmem [shape: f32[4,5,2], index: 1, kind: input, shape index: {}]   ;;  %s713_s2 = inlined_call_operand.vmem [shape: f32[5,5], index: 2, kind: input, shape index: {}]   ;;  %s714_s3 = inlined_call_operand.vmem [shape: f32[4,5,3], index: 3, kind: output, shape index: {}]  }
   0x1 LB: > { %s574_s13 = sadd.s32 4294967295, %s648_s12   ;;  %p578_p0 = scmp.ge.s32.totalorder %s648_s12, 1  ;;  %s648_s12 = sphi %s674_s12, %s13_s12  }
   0x2   : > { %p136_p1 = scmp.lt.s32.totalorder %s648_s12, 5 }
   0x4   : > { %p137_p2 = pnand %p578_p0, %p136_p1 }
   0x5   : > { %p158_p3 = scmp.lt.s32.totalorder (!%p137_p2), %s574_s13, 3 }
   0x6   : > { %140 = sbr.rel (%p137_p2) target bundleno = 1130 (0x46a), region = 32 }
   0xb   : > { %v166_v0 = vld [vmem:[%s711_s0] sm:$0xff]  ;;  %vm176_vm0 = vcmask 1041408   ;;  %v650_v1 = vmov 0.0   ;;  %vm651_vm1 = vmmov 0   ;;  %s716_s13 = smov (!%p158_p3, %s574_s13), 3  ;;  %vm172_vm2 = vcmask 15360  }
   0xc   : > { %599 = vmatprep.subr.mxu0 %v650_v1  ;;  %601 = vmatprep.mubr.msk.f32.mxu0 %vm651_vm1, %v650_v1  ;;  %s579_s16 = sshll.u32 %s716_s13, 3  ;;  %v250_v3 = vrot.slane %v166_v0, 3  ;;  %vm255_vm3 = vcmask 1042432   ;;  %v652_v4 = vmov 1   ;;  %v168_v5 = vlaneseq  ;;  %v429_v28 = vld [vmem:[%s713_s2] sm:$0x1f] }
   0xd   : > { %600 = vmatpush3.msk.msra.mxu0 %vm176_vm0, %v166_v0  ;;  %604 = vmatprep.subr.mxu1 %v650_v1  ;;  %s161_s19 = scalar_lea.vmem %s712_s1, %s579_s16  ;;  %vm251_vm4 = vcmask 23552   ;;  %vm441_vm5 = vcmask 1044480   ;;  %v653_v17 = vmov 0   ;;  %vm431_vm8 = vcmask 36864   ;;  %s165_s24 = scalar_lea.vmem %s714_s3, %s579_s16 }
   0xe   : > { %606 = vmatprep.mubr.msk.f32.mxu1 %vm651_vm1, %v650_v1  ;;  %609 = vmatprep.subr.mxu0 %v650_v1  ;;  %v167_v2 = vld [vmem:[%s161_s19] sm:$0x1f]  ;;  %v169_v6 = vshrl.u32 %v168_v5, 7  ;;  %v329_v18 = vand.u32 127, %v168_v5  ;;  %vm437_vm9 = vcmask 39936   ;;  %vm519_vm10 = vcmask 20480  }
   0xf   : > { %602 = vmatmul.mubr.msk.f32.vlgmr.msra.gmra.mxu0 %vm172_vm2, %v167_v2  ;;  %605 = vmatpush3.msk.msra.mxu1 %vm255_vm3, %v250_v3 }
  0x10   : > { %611 = vmatprep.mubr.msk.f32.mxu0 %vm651_vm1, %v650_v1  ;;  %614 = vmatprep.subr.mxu1 %v650_v1  ;;  %v170_v7 = vsub.s32 2, %v169_v6  ;;  %v333_v12 = vsub.s32 6, %v169_v6  ;;  %vm330_vm6 = vcmp.eq.s32.totalorder %v329_v18, 0 }
  0x11   : > { %631 = vset.pattern.permute.xlu0 %v652_v4 }
  0x12   : > { %v171_v8 = vrot.slane %v166_v0, %v170_v7  ;;  %v334_v14 = vrot.slane %v166_v0, %v333_v12 }
  0xcf   : > { %v246_v9 = vpop.f32.mrf.mxu0 }
  0xd0   : > { %v247_v10 = vadd.f32 %v246_v9, %v171_v8 }
  0xd1   : > { %v603_v11 = vpop.f32.mrf.mxu0 }
  0xd2   : > { %607 = vmatmul.mubr.msk.f32.vlgmr.msra.gmra.mxu1 %vm251_vm4, %v247_v10 }
  0xd3   : > { %615 = vmatpush3.msk.msra.mxu1 %vm441_vm5, %v247_v10  ;;  %616 = vmatprep.mubr.msk.f32.mxu1 %vm651_vm1, %v650_v1 }
 0x192   : > { %v324_v13 = vpop.f32.mrf.mxu1 }
 0x193   : > { %344 = vperm.xlu0 %631, %v324_v13   ;;  %v335_v16 = vadd.f32 %v334_v14, %v324_v13 }
 0x194   : > { %v608_v15 = vpop.f32.mrf.mxu1 }
 0x197   : > { %632 = vset.pattern.permute.xlu0 %v653_v17 }
 0x198   : > { %338 = vperm.xlu0 %632, %v335_v16  }
 0x19c   : > { %633 = vset.pattern.permute.xlu0 %v652_v4 }
 0x20e   : > { %v345_v19 = vpop.permute.xlu0 %344 }
 0x20f   : > { %v347_v20 = vsel %vm330_vm6, 1.0, %v345_v19 }
 0x210   : > { %610 = vmatpush3.xpose.msk.msra.mxu0 %vm172_vm2, %v347_v20 }
 0x213   : > { %v339_v21 = vpop.permute.xlu0 %338 }
 0x214   : > { %v341_v22 = vsel %vm330_vm6, %v339_v21, 1.0 }
 0x215   : > { %612 = vmatmul.mubr.msk.f32.vlgmr.msra.gmra.mxu0 %vm172_vm2, %v341_v22 }
 0x2d5   : > { %v420_v23 = vpop.f32.mrf.mxu0 }
 0x2d6   : > { %vm424_vm7 = vcmp.ge.f32.partialorder %v420_v23, 0.0  ;;  %v425_v24 = vmul.f32 0.01, %v420_v23 }
 0x2d7   : > { %v613_v25 = vpop.f32.mrf.mxu0 }
 0x2d8   : > { %v426_v26 = vsel %vm424_vm7, %v420_v23, %v425_v24 }
 0x2d9   : > { %v427_v27 = vmul.f32 1.442695, %v426_v26 }
 0x2db   : > { %634 = vpow2.f32 %v427_v27 }
 0x2e8   : > { %v635_v29 = vpop.eup %634 }
 0x2e9   : > { %v430_v30 = vmul.f32 %v635_v29, %v429_v28 }
 0x2eb   : > { %v432_v31 = vsel %vm431_vm8, %v430_v30, 0.0 }
 0x2ec   : > { %433 = vadd.xlane.f32.xlu1 %v432_v31 }
 0x375   : > { %v434_v32 = vpop.xlane.xlu1 %433 }
 0x376   : > { %636 = vrcp.f32 %v434_v32 }
 0x383   : > { %v637_v33 = vpop.eup %636 }
 0x384   : > { %v436_v34 = vmul.f32 %v637_v33, %v635_v29 }
 0x386   : > { %617 = vmatmul.mubr.msk.f32.vlgmr.msra.gmra.mxu1 %vm437_vm9, %v436_v34 }
 0x446   : > { %v510_v35 = vpop.f32.mrf.mxu1 }
 0x447   : > { %v514_v36 = vsub.f32 0.0, %v510_v35 }
 0x448   : > { %v618_v37 = vpop.f32.mrf.mxu1 }
 0x449   : > { %v515_v38 = vmul.f32 1.442695, %v514_v36 }
 0x44b   : > { %638 = vpow2.f32 %v515_v38 }
 0x458   : > { %v639_v39 = vpop.eup %638 }
 0x459   : > { %v517_v40 = vadd.f32 1.0, %v639_v39 }
 0x45b   : > { %640 = vrcp.f32 %v517_v40 }
 0x468   : > { %v641_v41 = vpop.eup %640 }
 0x469   : > { %520 = vst.msk [vmem:[%s165_s24] sm:$0x1f] %vm519_vm10, %v641_v41 }
 0x46a PF: > { %s13_s12 = sadd.s32 1, %s648_s12  }
 0x46b   : > { %p10_p4 = scmp.ge.s32.totalorder %s13_s12, 6  }
 0x46d   :  { %12 = sbr.rel (!%p10_p4) target bundleno = 1 (0x1), region = 62 }

</bundles_post_ra>
